<compile_context>
chip_gen: v5e
topology: v5e:2x2
jax: 0.10.0
libtpu: 0.0.40
codegen_flags: <defaults>
</compile_context>

<pallas_src>
import functools

import jax
import jax.numpy as jnp
from jax.experimental import pallas as pl
from jax.experimental.pallas import tpu as pltpu


def _conv1x1_kernel(w_ref, b_ref, x_ref, o_ref):
    """Pure-VPU 1x1 conv: out[o] = sum_c w[o, c] * x[c] + b[o].

    w_ref: SMEM (Cout, Cin) scalars
    b_ref: SMEM (Cout,)     scalars
    x_ref: VMEM (Cin,  st, 128) dense spatial tile
    o_ref: VMEM (Cout, st, 128)
    """
    cin = x_ref.shape[0]
    cout = o_ref.shape[0]
    # Load each input channel once (dense (st, 128) tiles, full sublane util).
    xs = [x_ref[c] for c in range(cin)]
    # Unrolled broadcast-FMA; Cin*Cout is tiny (12 mul + 12 add per element),
    # far under the 4-VALU/cycle budget, so HBM streaming stays the bottleneck.
    # NOTE: for large channel counts an MXU jnp.dot path would be preferable.
    for o in range(cout):
        acc = xs[0] * w_ref[o, 0]
        for c in range(1, cin):
            acc = acc + xs[c] * w_ref[o, c]
        o_ref[o] = (acc + b_ref[o]).astype(o_ref.dtype)


def _round_up(x, m):
    return ((x + m - 1) // m) * m


def _cdiv(a, b):
    return (a + b - 1) // b


@functools.partial(jax.jit, static_argnames=("st_cap", "min_grid_steps"))
def outconv_forward(x, weight, bias, *, st_cap=2048, min_grid_steps=4):
    """1x1 conv forward (== nn.Conv2d(in_ch, out_ch, 1)).

    x:      (N, C_in, H, W) NCHW float32
    weight: (C_out, C_in) or (C_out, C_in, 1, 1)
    bias:   (C_out,)
    returns (N, C_out, H, W) NCHW

    st_cap: max spatial tile, in rows of 128 lanes (2048 rows == 256K elems,
            ~7.3 MB HBM / ~15 MiB double-buffered VMEM per grid step).
    """
    N, Cin, H, W = x.shape
    Cout = weight.shape[0]
    w2 = weight.reshape(Cout, Cin)
    S = H * W

    # Lane alignment only: pad H*W to a multiple of 128 when needed (<=127
    # cols). No tile-sized padding is ever added.
    S128 = _round_up(S, 128)
    x3 = x.reshape(N, Cin, S)
    if S128 != S:
        x3 = jnp.pad(x3, ((0, 0), (0, 0), (0, S128 - S)))
    n_rows = S128 // 128
    # Free (metadata-only) reshape: spatial axis becomes dense (rows, 128)
    # so all in-kernel VPU ops run on fully packed (8,128) vregs.
    x4 = x3.reshape(N, Cin, n_rows, 128)

    # Spatial tile in rows of 128 lanes: as large as possible (amortize the
    # fixed per-step cost), but leave >= min_grid_steps total grid steps for
    # megacore (v7x) load balance when the input allows it.
    tiles_wanted = max(_cdiv(n_rows, st_cap), _cdiv(min_grid_steps, N), 1)
    st = _round_up(_cdiv(n_rows, tiles_wanted), 8)   # sublane-aligned
    if st >= n_rows:
        st = n_rows                                  # full-extent block is always legal
    grid_s = _cdiv(n_rows, st)   # ragged last tile: reads padded, writes masked by Pallas

    cost = pl.CostEstimate(
        flops=2 * N * S * Cin * Cout,
        transcendentals=0,
        bytes_accessed=4 * (N * Cin * S + N * Cout * S + Cout * Cin + Cout),
    )

    out4 = pl.pallas_call(
        _conv1x1_kernel,
        out_shape=jax.ShapeDtypeStruct((N, Cout, n_rows, 128), x.dtype),
        grid_spec=pltpu.PrefetchScalarGridSpec(
            num_scalar_prefetch=0,
            grid=(N, grid_s),
            in_specs=[
                # Tiny weight/bias live in SMEM for the whole grid -> cheap
                # scalar reads, no MXU / no (8,128) relayout of a (3,4) LHS.
                pl.BlockSpec(memory_space=pltpu.MemorySpace.SMEM),
                pl.BlockSpec(memory_space=pltpu.MemorySpace.SMEM),
                # batch dim squeezed out of the kernel view
                pl.BlockSpec((None, Cin, st, 128), lambda n, s: (n, 0, s, 0)),
            ],
            out_specs=pl.BlockSpec((None, Cout, st, 128), lambda n, s: (n, 0, s, 0)),
        ),
        compiler_params=pltpu.CompilerParams(
            dimension_semantics=("parallel", "parallel"),
            # Double-buffered blocks ~15 MiB at st_cap=2048; give headroom but
            # stay well below v7x's 64 MiB physical VMEM per TensorCore.
            vmem_limit_bytes=40 * 1024 * 1024,
        ),
        cost_estimate=cost,
    )(w2, bias, x4)

    out3 = out4.reshape(N, Cout, S128)
    if S128 != S:
        out3 = out3[:, :, :S]
    return out3.reshape(N, Cout, H, W)


def _reference(x, weight, bias):
    w2 = weight.reshape(weight.shape[0], x.shape[1])
    return jnp.einsum("nchw,oc->nohw", x, w2) + bias[None, :, None, None]


if __name__ == "__main__":
    key = jax.random.PRNGKey(0)
    k_x, k_w, k_b = jax.random.split(key, 3)

    N, Cin, H, W = 2, 4, 16, 16
    Cout = 3

    x = jax.random.normal(k_x, (N, Cin, H, W), dtype=jnp.float32)
    # Deterministic synthetic parameters (matches nn.Conv2d(in_ch, out_ch, 1))
    weight = jax.random.normal(k_w, (Cout, Cin), dtype=jnp.float32) * 0.1
    bias = jax.random.normal(k_b, (Cout,), dtype=jnp.float32) * 0.1

    # Main check (spec shapes): batch=2, channels 4->3, 16x16 spatial.
    out = jax.block_until_ready(outconv_forward(x, weight, bias))
    assert out.shape == (N, Cout, H, W)
    assert jnp.allclose(out, _reference(x, weight, bias), atol=1e-5, rtol=1e-5)

    # Secondary check: N=1, multi-tile spatial grid with a ragged last sublane
    # tile (H*W = 1920 -> 15 rows of 128, tile = 8 rows) -> exercises the
    # cdiv-grid masked-write path used for non-tile-aligned shapes.
    x2 = jax.random.normal(k_x, (1, Cin, 40, 48), dtype=jnp.float32)
    out2 = jax.block_until_ready(
        outconv_forward(x2, weight, bias, st_cap=8, min_grid_steps=1))
    assert jnp.allclose(out2, _reference(x2, weight, bias), atol=1e-5, rtol=1e-5)

    # Third check: H*W = 273 not a multiple of 128 -> lane-pad + trailing slice path.
    x3 = jax.random.normal(k_x, (2, Cin, 13, 21), dtype=jnp.float32)
    out3 = jax.block_until_ready(outconv_forward(x3, weight, bias))
    assert jnp.allclose(out3, _reference(x3, weight, bias), atol=1e-5, rtol=1e-5)

    print("KERNEL_OK")
</pallas_src>

<mosaic_0001>
module attributes {stable_mosaic.version = 11 : i64} {
  func.func @_conv1x1_kernel(%arg0: i32, %arg1: i32, %arg2: memref<3x4xf32, #tpu.memory_space<smem>>, %arg3: memref<3xf32, #tpu.memory_space<smem>>, %arg4: memref<1x4x2x128xf32, #tpu.memory_space<vmem>>, %arg5: memref<1x3x2x128xf32, #tpu.memory_space<vmem>>) attributes {dimension_semantics = [#tpu.dimension_semantics<parallel>, #tpu.dimension_semantics<parallel>], iteration_bounds = array<i64: 2, 1>, scalar_prefetch = 0 : i64, scratch_operands = 0 : i64, tpu.core_type = #tpu.core_type<tc>, window_params = [{transform_indices = @transform_0, window_bounds = array<i64: 3, 4>}, {transform_indices = @transform_1, window_bounds = array<i64: 3>}, {transform_indices = @transform_2, window_bounds = array<i64: 1, 4, 2, 128>}, {transform_indices = @transform_3, window_bounds = array<i64: 1, 3, 2, 128>}]} {
    %c0 = arith.constant 0 : index
    %c0_0 = arith.constant 0 : index
    %c0_1 = arith.constant 0 : index
    %c0_2 = arith.constant 0 : index
    %0 = vector.load %arg4[%c0, %c0_0, %c0_1, %c0_2] : memref<1x4x2x128xf32, #tpu.memory_space<vmem>>, vector<1x1x2x128xf32>
    %1 = vector.shape_cast %0 : vector<1x1x2x128xf32> to vector<2x128xf32>
    %c0_3 = arith.constant 0 : index
    %c1 = arith.constant 1 : index
    %c0_4 = arith.constant 0 : index
    %c0_5 = arith.constant 0 : index
    %2 = vector.load %arg4[%c0_3, %c1, %c0_4, %c0_5] : memref<1x4x2x128xf32, #tpu.memory_space<vmem>>, vector<1x1x2x128xf32>
    %3 = vector.shape_cast %2 : vector<1x1x2x128xf32> to vector<2x128xf32>
    %c0_6 = arith.constant 0 : index
    %c2 = arith.constant 2 : index
    %c0_7 = arith.constant 0 : index
    %c0_8 = arith.constant 0 : index
    %4 = vector.load %arg4[%c0_6, %c2, %c0_7, %c0_8] : memref<1x4x2x128xf32, #tpu.memory_space<vmem>>, vector<1x1x2x128xf32>
    %5 = vector.shape_cast %4 : vector<1x1x2x128xf32> to vector<2x128xf32>
    %c0_9 = arith.constant 0 : index
    %c3 = arith.constant 3 : index
    %c0_10 = arith.constant 0 : index
    %c0_11 = arith.constant 0 : index
    %6 = vector.load %arg4[%c0_9, %c3, %c0_10, %c0_11] : memref<1x4x2x128xf32, #tpu.memory_space<vmem>>, vector<1x1x2x128xf32>
    %7 = vector.shape_cast %6 : vector<1x1x2x128xf32> to vector<2x128xf32>
    %c0_12 = arith.constant 0 : index
    %c0_13 = arith.constant 0 : index
    %8 = memref.load %arg2[%c0_12, %c0_13] : memref<3x4xf32, #tpu.memory_space<smem>>
    %9 = vector.broadcast %8 : f32 to vector<2x128xf32>
    %10 = arith.mulf %1, %9 : vector<2x128xf32>
    %c0_14 = arith.constant 0 : index
    %c1_15 = arith.constant 1 : index
    %11 = memref.load %arg2[%c0_14, %c1_15] : memref<3x4xf32, #tpu.memory_space<smem>>
    %12 = vector.broadcast %11 : f32 to vector<2x128xf32>
    %13 = arith.mulf %3, %12 : vector<2x128xf32>
    %14 = arith.addf %10, %13 : vector<2x128xf32>
    %c0_16 = arith.constant 0 : index
    %c2_17 = arith.constant 2 : index
    %15 = memref.load %arg2[%c0_16, %c2_17] : memref<3x4xf32, #tpu.memory_space<smem>>
    %16 = vector.broadcast %15 : f32 to vector<2x128xf32>
    %17 = arith.mulf %5, %16 : vector<2x128xf32>
    %18 = arith.addf %14, %17 : vector<2x128xf32>
    %c0_18 = arith.constant 0 : index
    %c3_19 = arith.constant 3 : index
    %19 = memref.load %arg2[%c0_18, %c3_19] : memref<3x4xf32, #tpu.memory_space<smem>>
    %20 = vector.broadcast %19 : f32 to vector<2x128xf32>
    %21 = arith.mulf %7, %20 : vector<2x128xf32>
    %22 = arith.addf %18, %21 : vector<2x128xf32>
    %c0_20 = arith.constant 0 : index
    %23 = memref.load %arg3[%c0_20] : memref<3xf32, #tpu.memory_space<smem>>
    %24 = vector.broadcast %23 : f32 to vector<2x128xf32>
    %25 = arith.addf %22, %24 : vector<2x128xf32>
    %c0_21 = arith.constant 0 : index
    %c0_22 = arith.constant 0 : index
    %c0_23 = arith.constant 0 : index
    %c0_24 = arith.constant 0 : index
    %26 = vector.load %arg5[%c0_21, %c0_22, %c0_23, %c0_24] : memref<1x3x2x128xf32, #tpu.memory_space<vmem>>, vector<1x1x2x128xf32>
    %27 = vector.shape_cast %26 : vector<1x1x2x128xf32> to vector<2x128xf32>
    %28 = vector.shape_cast %25 : vector<2x128xf32> to vector<1x1x2x128xf32>
    tpu.vector_store %arg5[%c0_21, %c0_22, %c0_23, %c0_24], %28 {strides = array<i32>} : memref<1x3x2x128xf32, #tpu.memory_space<vmem>>, vector<1x1x2x128xf32>,
    %c1_25 = arith.constant 1 : index
    %c0_26 = arith.constant 0 : index
    %29 = memref.load %arg2[%c1_25, %c0_26] : memref<3x4xf32, #tpu.memory_space<smem>>
    %30 = vector.broadcast %29 : f32 to vector<2x128xf32>
    %31 = arith.mulf %1, %30 : vector<2x128xf32>
    %c1_27 = arith.constant 1 : index
    %c1_28 = arith.constant 1 : index
    %32 = memref.load %arg2[%c1_27, %c1_28] : memref<3x4xf32, #tpu.memory_space<smem>>
    %33 = vector.broadcast %32 : f32 to vector<2x128xf32>
    %34 = arith.mulf %3, %33 : vector<2x128xf32>
    %35 = arith.addf %31, %34 : vector<2x128xf32>
    %c1_29 = arith.constant 1 : index
    %c2_30 = arith.constant 2 : index
    %36 = memref.load %arg2[%c1_29, %c2_30] : memref<3x4xf32, #tpu.memory_space<smem>>
    %37 = vector.broadcast %36 : f32 to vector<2x128xf32>
    %38 = arith.mulf %5, %37 : vector<2x128xf32>
    %39 = arith.addf %35, %38 : vector<2x128xf32>
    %c1_31 = arith.constant 1 : index
    %c3_32 = arith.constant 3 : index
    %40 = memref.load %arg2[%c1_31, %c3_32] : memref<3x4xf32, #tpu.memory_space<smem>>
    %41 = vector.broadcast %40 : f32 to vector<2x128xf32>
    %42 = arith.mulf %7, %41 : vector<2x128xf32>
    %43 = arith.addf %39, %42 : vector<2x128xf32>
    %c1_33 = arith.constant 1 : index
    %44 = memref.load %arg3[%c1_33] : memref<3xf32, #tpu.memory_space<smem>>
    %45 = vector.broadcast %44 : f32 to vector<2x128xf32>
    %46 = arith.addf %43, %45 : vector<2x128xf32>
    %c0_34 = arith.constant 0 : index
    %c1_35 = arith.constant 1 : index
    %c0_36 = arith.constant 0 : index
    %c0_37 = arith.constant 0 : index
    %47 = vector.load %arg5[%c0_34, %c1_35, %c0_36, %c0_37] : memref<1x3x2x128xf32, #tpu.memory_space<vmem>>, vector<1x1x2x128xf32>
    %48 = vector.shape_cast %47 : vector<1x1x2x128xf32> to vector<2x128xf32>
    %49 = vector.shape_cast %46 : vector<2x128xf32> to vector<1x1x2x128xf32>
    tpu.vector_store %arg5[%c0_34, %c1_35, %c0_36, %c0_37], %49 {strides = array<i32>} : memref<1x3x2x128xf32, #tpu.memory_space<vmem>>, vector<1x1x2x128xf32>,
    %c2_38 = arith.constant 2 : index
    %c0_39 = arith.constant 0 : index
    %50 = memref.load %arg2[%c2_38, %c0_39] : memref<3x4xf32, #tpu.memory_space<smem>>
    %51 = vector.broadcast %50 : f32 to vector<2x128xf32>
    %52 = arith.mulf %1, %51 : vector<2x128xf32>
    %c2_40 = arith.constant 2 : index
    %c1_41 = arith.constant 1 : index
    %53 = memref.load %arg2[%c2_40, %c1_41] : memref<3x4xf32, #tpu.memory_space<smem>>
    %54 = vector.broadcast %53 : f32 to vector<2x128xf32>
    %55 = arith.mulf %3, %54 : vector<2x128xf32>
    %56 = arith.addf %52, %55 : vector<2x128xf32>
    %c2_42 = arith.constant 2 : index
    %c2_43 = arith.constant 2 : index
    %57 = memref.load %arg2[%c2_42, %c2_43] : memref<3x4xf32, #tpu.memory_space<smem>>
    %58 = vector.broadcast %57 : f32 to vector<2x128xf32>
    %59 = arith.mulf %5, %58 : vector<2x128xf32>
    %60 = arith.addf %56, %59 : vector<2x128xf32>
    %c2_44 = arith.constant 2 : index
    %c3_45 = arith.constant 3 : index
    %61 = memref.load %arg2[%c2_44, %c3_45] : memref<3x4xf32, #tpu.memory_space<smem>>
    %62 = vector.broadcast %61 : f32 to vector<2x128xf32>
    %63 = arith.mulf %7, %62 : vector<2x128xf32>
    %64 = arith.addf %60, %63 : vector<2x128xf32>
    %c2_46 = arith.constant 2 : index
    %65 = memref.load %arg3[%c2_46] : memref<3xf32, #tpu.memory_space<smem>>
    %66 = vector.broadcast %65 : f32 to vector<2x128xf32>
    %67 = arith.addf %64, %66 : vector<2x128xf32>
    %c0_47 = arith.constant 0 : index
    %c2_48 = arith.constant 2 : index
    %c0_49 = arith.constant 0 : index
    %c0_50 = arith.constant 0 : index
    %68 = vector.load %arg5[%c0_47, %c2_48, %c0_49, %c0_50] : memref<1x3x2x128xf32, #tpu.memory_space<vmem>>, vector<1x1x2x128xf32>
    %69 = vector.shape_cast %68 : vector<1x1x2x128xf32> to vector<2x128xf32>
    %70 = vector.shape_cast %67 : vector<2x128xf32> to vector<1x1x2x128xf32>
    tpu.vector_store %arg5[%c0_47, %c2_48, %c0_49, %c0_50], %70 {strides = array<i32>} : memref<1x3x2x128xf32, #tpu.memory_space<vmem>>, vector<1x1x2x128xf32>,
    return
  }
  func.func @transform_0(%arg0: i32, %arg1: i32) -> (i32, i32) {
    %c0_i32 = arith.constant 0 : i32
    %c0_i32_0 = arith.constant 0 : i32
    %c0_i32_1 = arith.constant 0 : i32
    return %c0_i32, %c0_i32_0 : i32, i32
  }
  func.func @transform_1(%arg0: i32, %arg1: i32) -> i32 {
    %c0_i32 = arith.constant 0 : i32
    %c0_i32_0 = arith.constant 0 : i32
    return %c0_i32 : i32
  }
  func.func @transform_2(%arg0: i32, %arg1: i32) -> (i32, i32, i32, i32) {
    %c0_i32 = arith.constant 0 : i32
    %c0_i32_0 = arith.constant 0 : i32
    %c0_i32_1 = arith.constant 0 : i32
    return %arg0, %c0_i32, %arg1, %c0_i32_0 : i32, i32, i32, i32
  }
  func.func @transform_3(%arg0: i32, %arg1: i32) -> (i32, i32, i32, i32) {
    %c0_i32 = arith.constant 0 : i32
    %c0_i32_0 = arith.constant 0 : i32
    %c0_i32_1 = arith.constant 0 : i32
    return %arg0, %c0_i32, %arg1, %c0_i32_0 : i32, i32, i32, i32
  }
}

</mosaic_0001>

<bundles_post_ra>
// kernel: outconv_forward.1
= control target key start
LH: loop header
LB: loop body
LE: loop exit
PB: predicated region body
PF: predicated region fallthrough
CT: control target
= control target key end

     0   :  { %8 = vsyncpa [#allocation3], 0  ;;  %s634_s0 = inlined_call_operand.vmem [shape: f32[3,4], index: 0, kind: input, shape index: {}]   ;;  %s635_s1 = inlined_call_operand.vmem [shape: f32[3], index: 1, kind: input, shape index: {}]   ;;  %s636_s2 = inlined_call_operand.vmem [shape: f32[2,4,2,128], index: 2, kind: input, shape index: {}]   ;;  %s637_s3 = inlined_call_operand.vmem [shape: f32[2,3,2,128], index: 3, kind: output, shape index: {}]  }
   0x1   :  { %9 = vsyncpa [#allocation5], 0  ;;  %s564_s12 = smov 0   ;;  %s566_s13 = smov 0  }
   0x2   :  { %s568_s14 = smov 0  }
   0x3 LB: > { %s401_s15 = sadd.s32 4294967295, %s540_s14   ;;  %s27_s16 = sadd.s32 1, %s536_s13  ;;  %s540_s14 = sphi %s568_s14, %s15_s14   ;;  %s536_s13 = sphi %s566_s13, %s640_s13   ;;  %s532_s12 = sphi %s564_s12, %s639_s12  }
   0x4   : > { %p29_p0 = scmp.ge.s32.totalorder %s27_s16, 2  ;;  %p403_p1 = scmp.ge.s32.totalorder %s540_s14, 1 }
   0x5   : > { %p130_p2 = scmp.lt.s32.totalorder %s540_s14, 3  ;;  %p585_p4 = scmp.eq.s32.totalorder %s401_s15, 0 }
   0x6   : > { %s642_s16 = smov (%p29_p0, %s27_s16), 0  ;;  %s142_s20 = sshll.u32 %s634_s0, 4  ;;  %s143_s20 = int_to_ptr.vmem [resolvable:$true] %s142_s20 }
   0x7   : > { %p131_p3 = pnand %p403_p1, %p130_p2  ;;  %s152_s23 = sshll.u32 %s635_s1, 4  ;;  %s153_s23 = int_to_ptr.vmem [resolvable:$true] %s152_s23 }
   0x8   : > { %s542_s24 = smov [#allocation2]   ;;  %s543_s25 = smov [#allocation4]  }
   0x9   : > { %p443_p5 = pneg %p131_p3 }
   0xa   : > { %176 = sbr.rel (%p131_p3) target bundleno = 50 (0x32), region = 32 }
   0xb   : > { %p444_p6 = pnand %p585_p4, %p443_p5 }
   0xd   : > { %446 = dma.vmem_to_smem (!%p444_p6), %s143_s20, 64, %s542_s24, [#allocation3]  }
   0xe   : > { %449 = dma.vmem_to_smem (!%p444_p6), %s153_s23, 16, %s543_s25, [#allocation5]  }
   0xf   : > { %523 = dma.done.wait (%p585_p4), [#allocation3], 64  }
  0x10   : > { %525 = vsyncadd (%p585_p4), [#allocation3], 4294967232 }
  0x11   : > { %527 = dma.done.wait (%p585_p4), [#allocation5], 16  }
  0x12   : > { %529 = vsyncadd (%p585_p4), [#allocation5], 4294967280 }
  0x13   : > { %188 = sfence }
  0x14   : > { %p213_p7 = scmp.lt.s32.totalorder %s532_s12, 1  ;;  %s236_s26 = sld [smem:[#allocation2]] }
  0x15   : > { %s416_s27 = sld [smem:[#allocation2 + $0x1]] }
  0x16   : > { %s644_s12 = smov (!%p213_p7, %s532_s12), 1  ;;  %s417_s28 = sld [smem:[#allocation2 + $0x2]] }
  0x17   : > { %s433_s29 = sshll.u32 %s644_s12, 3  ;;  %s418_s6 = sld [smem:[#allocation2 + $0x3]] }
  0x18   : > { %s220_s5 = scalar_lea.vmem %s636_s2, %s433_s29  ;;  %s251_s7 = sld [smem:[#allocation4]] }
  0x19   : > { %v229_v0 = vld [vmem:[%s220_s5] sm:$0x3]  ;;  %v413_v1 = vld [vmem:[%s220_s5 + $0x2] sm:$0x3]  ;;  %v414_v3 = vld [vmem:[%s220_s5 + $0x4] sm:$0x3] }
  0x1a   : > { %v237_v2 = vstv %s236_s26  ;;  %s419_s8 = sld [smem:[#allocation2 + $0x80]]  ;;  %v415_v7 = vld [vmem:[%s220_s5 + $0x6] sm:$0x3]  ;;  %s434_s11 = smul.u32 6, %s644_s12 }
  0x1b   : > { %v238_v4 = vmul.f32 %v237_v2, %v229_v0  ;;  %v240_v5 = vstv %s416_s27  ;;  %s420_s9 = sld [smem:[#allocation2 + $0x81]] }
  0x1c   : > { %v241_v6 = vmul.f32 %v413_v1, %v240_v5  ;;  %v244_v8 = vstv %s417_s28  ;;  %s421_s10 = sld [smem:[#allocation2 + $0x82]]  ;;  %s619_s22 = scalar_lea.vmem %s637_s3, %s434_s11 }
  0x1d   : > { %v245_v10 = vmul.f32 %v414_v3, %v244_v8  ;;  %v248_v11 = vstv %s418_s6  ;;  %s422_s15 = sld [smem:[#allocation2 + $0x83]] }
  0x1e   : > { %v242_v9 = vadd.f32 %v241_v6, %v238_v4  ;;  %v249_v13 = vmul.f32 %v415_v7, %v248_v11  ;;  %s614_s17 = sld [smem:[#allocation4 + $0x1]]  ;;  %v252_v14 = vstv %s251_s7 }
  0x1f   : > { %s425_s18 = sld [smem:[#allocation2 + $0x100]] }
  0x20   : > { %v246_v12 = vadd.f32 %v245_v10, %v242_v9  ;;  %v256_v16 = vstv %s419_s8  ;;  %s426_s19 = sld [smem:[#allocation2 + $0x101]] }
  0x21   : > { %v257_v17 = vmul.f32 %v256_v16, %v229_v0  ;;  %v259_v18 = vstv %s420_s9  ;;  %s427_s12 = sld [smem:[#allocation2 + $0x102]] }
  0x22   : > { %v250_v15 = vadd.f32 %v249_v13, %v246_v12  ;;  %v260_v20 = vmul.f32 %v413_v1, %v259_v18  ;;  %v263_v21 = vstv %s421_s10  ;;  %s428_s23 = sld [smem:[#allocation2 + $0x103]] }
  0x23   : > { %v264_v22 = vmul.f32 %v414_v3, %v263_v21  ;;  %v267_v23 = vstv %s422_s15  ;;  %s429_s24 = sld [smem:[#allocation4 + $0x2]] }
  0x24   : > { %v253_v19 = vadd.f32 %v252_v14, %v250_v15  ;;  %v261_v24 = vadd.f32 %v260_v20, %v257_v17  ;;  %v268_v25 = vmul.f32 %v415_v7, %v267_v23  ;;  %v271_v30 = vstv %s614_s17 }
  0x25   : > { %v276_v26 = vstv %s425_s18 }
  0x26   : > { %254 = vst [vmem:[%s619_s22] sm:$0x3] %v253_v19  ;;  %v265_v27 = vadd.f32 %v264_v22, %v261_v24  ;;  %v277_v28 = vmul.f32 %v276_v26, %v229_v0  ;;  %v279_v29 = vstv %s426_s19 }
  0x27   : > { %v280_v31 = vmul.f32 %v413_v1, %v279_v29  ;;  %v283_v32 = vstv %s427_s12 }
  0x28   : > { %v269_v33 = vadd.f32 %v268_v25, %v265_v27  ;;  %v284_v34 = vmul.f32 %v414_v3, %v283_v32  ;;  %v287_v35 = vstv %s428_s23 }
  0x29   : > { %v281_v36 = vadd.f32 %v280_v31, %v277_v28  ;;  %v288_v37 = vmul.f32 %v415_v7, %v287_v35  ;;  %v291_v40 = vstv %s429_s24 }
  0x2a   : > { %v272_v38 = vadd.f32 %v271_v30, %v269_v33 }
  0x2b   : > { %v285_v39 = vadd.f32 %v284_v34, %v281_v36 }
  0x2c   : > { %424 = vst [vmem:[%s619_s22 + $0x2] sm:$0x3] %v272_v38 }
  0x2d   : > { %v289_v41 = vadd.f32 %v288_v37, %v285_v39 }
  0x2f   : > { %v292_v42 = vadd.f32 %v291_v40, %v289_v41 }
  0x31   : > { %430 = vst [vmem:[%s619_s22 + $0x4] sm:$0x3] %v292_v42 }
  0x32 PF: > { %s15_s14 = sadd.s32 1, %s540_s14   ;;  %s639_s12 = smov %s536_s13 }
  0x33   : > { %p12_p8 = scmp.ge.s32.totalorder %s15_s14, 4   ;;  %s640_s13 = smov %s642_s16 }
  0x35   :  { %14 = sbr.rel (!%p12_p8) target bundleno = 3 (0x3), region = 76 }
  0x3a   :  { %322 = vsyncpa [#allocation3], 1 }
  0x3b   :  { %324 = vsyncpa [#allocation3 + $0x1], 1 }
  0x3c   :  { %325 = vsyncpa [#allocation5], 1 }

</bundles_post_ra>
